<compile_context>
chip_gen: v7x
topology: tpu7x:2x2x1
jax: 0.10.0
libtpu: 0.0.40
codegen_flags: <defaults>
</compile_context>

<pallas_src>
import jax
import jax.numpy as jnp
from jax.experimental import pallas as pl
from jax.experimental.pallas import tpu as pltpu


_SMALL_FASTPATH_BYTES = 1 << 20  # below this, plain XLA slice wins


def _chomp_copy_kernel(x_ref, o_ref):
    # x_ref: (TR, l_in_block), o_ref: (TR, l_out). Copy the leading l_out
    # lanes (static slice at lane 0 -> no cross-lane shuffle).
    l_out = o_ref.shape[-1]
    o_ref[...] = x_ref[:, pl.ds(0, l_out)]


def _sublane_multiple(dtype) -> int:
    itemsize = jnp.dtype(dtype).itemsize
    return {4: 8, 2: 16, 1: 32}.get(itemsize, 8)


def _pair_budget_bytes() -> int:
    """Bytes allowed for one (input block + output block) pair (2x when
    double-buffered by the pipeline)."""
    try:
        kind = jax.devices()[0].device_kind.lower()
    except Exception:
        kind = ""
    if "v6" in kind or "v7" in kind:
        # v6e: 32 MiB scoped default (128 MiB physical).
        # v7x: 32 MiB scoped default, 64 MiB physical per core.
        # 12 MiB pair -> 24 MiB double-buffered: fits both with headroom.
        return 12 * 1024 * 1024
    # v5e (16 MiB scoped default) and unknown chips: stay conservative.
    return 4 * 1024 * 1024


def _round_up(x: int, m: int) -> int:
    return ((x + m - 1) // m) * m


def chomp1d(x: jax.Array, chomp_size: int, *, force_pallas: bool = False) -> jax.Array:
    """Equivalent of Chomp1d(chomp_size)(x) for x of shape (N, C, L)."""
    if chomp_size <= 0:
        # PyTorch's x[..., :-0] would be empty; TCN always uses chomp_size > 0.
        raise ValueError("chomp_size must be positive (matches x[..., :-s])")
    n, c, l = x.shape
    if chomp_size >= l:
        raise ValueError(f"chomp_size ({chomp_size}) must be < L ({l})")
    l_out = l - chomp_size

    itemsize = jnp.dtype(x.dtype).itemsize

    # Small-tensor fast path: pallas_call launch/pipeline overhead dominates
    # and an output last dim < 128 would force masked vst.msk stores.
    if not force_pallas and x.size * itemsize < _SMALL_FASTPATH_BYTES:
        return x[:, :, :l_out]

    # Flatten to (N*C, L); reshape of a contiguous NCL tensor is free.
    rows = n * c
    x2 = x.reshape(rows, l)

    sublane = _sublane_multiple(x.dtype)

    # Cap the chomped-tail overread at <128 lanes: a (TR, k*128) input block
    # is legal even when it is not the full array lane dim; fall back to the
    # full L only when L itself is < the next 128 boundary.
    l_in_block = min(l, _round_up(l_out, 128))

    # Size the row tile so one (input + output) block pair stays under the
    # per-generation budget (double-buffered footprint = 2x that).
    budget_bytes = _pair_budget_bytes()
    bytes_per_row = (l_in_block + l_out) * itemsize
    tr_budget = max(1, budget_bytes // bytes_per_row)

    if tr_budget >= rows:
        tr = rows  # single row-block; full dim is always a legal block dim
    else:
        tr = max(sublane, (tr_budget // sublane) * sublane)
        tr = min(tr, rows)

    # Ensure >= 2 grid steps whenever rows allow it, so v7x's two TensorCores
    # both stream the copy ("parallel" axis). Negligible cost on v5e/v6e.
    if tr >= rows and rows >= 2 * sublane:
        half = pl.cdiv(rows, 2)
        tr = min(rows, _round_up(half, sublane))

    grid = (pl.cdiv(rows, tr),)

    # Guard the forced-minimum-tile edge case: if the double-buffered
    # footprint could exceed the most restrictive scoped-VMEM default
    # (v5e's 16 MiB), pin vmem_limit_bytes (capped below v7x's 64 MiB).
    pair_bytes = tr * bytes_per_row
    needed_bytes = 2 * pair_bytes + (1 << 20)
    compiler_kwargs = dict(dimension_semantics=("parallel",))
    if needed_bytes > 14 * 1024 * 1024:
        compiler_kwargs["vmem_limit_bytes"] = min(needed_bytes, 48 * 1024 * 1024)

    out2 = pl.pallas_call(
        _chomp_copy_kernel,
        out_shape=jax.ShapeDtypeStruct((rows, l_out), x.dtype),
        grid_spec=pltpu.PrefetchScalarGridSpec(
            num_scalar_prefetch=0,
            grid=grid,
            in_specs=[pl.BlockSpec((tr, l_in_block), lambda i: (i, 0))],
            out_specs=pl.BlockSpec((tr, l_out), lambda i: (i, 0)),
        ),
        compiler_params=pltpu.CompilerParams(**compiler_kwargs),
    )(x2)

    return out2.reshape(n, c, l_out)


if __name__ == "__main__":
    key = jax.random.PRNGKey(0)

    # Case 1: small TCN-like shape, L < 128 -> full-L input block path.
    N, C, L = 2, 4, 16
    chomp_size = 3
    x = jax.random.normal(key, (N, C, L), dtype=jnp.float32)
    out = jax.block_until_ready(chomp1d(x, chomp_size, force_pallas=True))
    ref = x[:, :, :-chomp_size]
    assert out.shape == (N, C, L - chomp_size), out.shape
    assert out.dtype == x.dtype
    assert jnp.array_equal(out, ref)

    # Case 2: l_out is an exact multiple of 128 -> zero-overread input block.
    x2 = jax.random.normal(jax.random.PRNGKey(0), (2, 4, 144), dtype=jnp.float32)
    out2 = jax.block_until_ready(chomp1d(x2, 16, force_pallas=True))
    assert jnp.array_equal(out2, x2[:, :, :-16])

    # Case 3: ragged l_out with large chomp -> overread capped at <128 lanes
    # (l_out=270 -> l_in_block=384 instead of the full L=400).
    x3 = jax.random.normal(jax.random.PRNGKey(0), (2, 4, 400), dtype=jnp.float32)
    out3 = jax.block_until_ready(chomp1d(x3, 130, force_pallas=True))
    assert jnp.array_equal(out3, x3[:, :, :-130])

    # Case 4: bf16, enough rows that the grid splits into >=2 row blocks.
    x4 = jax.random.normal(jax.random.PRNGKey(0), (8, 16, 144), dtype=jnp.bfloat16)
    out4 = jax.block_until_ready(chomp1d(x4, 16, force_pallas=True))
    assert jnp.array_equal(out4, x4[:, :, :-16])

    # Case 5: default auto path for tiny inputs (XLA slice fast path).
    out5 = jax.block_until_ready(chomp1d(x, chomp_size))
    assert jnp.array_equal(out5, ref)

    print("KERNEL_OK")
</pallas_src>

<mosaic_0001>
module attributes {stable_mosaic.version = 11 : i64} {
  func.func @_chomp_copy_kernel(%arg0: i32, %arg1: memref<8x16xf32, #tpu.memory_space<vmem>>, %arg2: memref<8x13xf32, #tpu.memory_space<vmem>>) attributes {dimension_semantics = [#tpu.dimension_semantics<parallel>], iteration_bounds = array<i64: 1>, scalar_prefetch = 0 : i64, scratch_operands = 0 : i64, tpu.core_type = #tpu.core_type<tc>, window_params = [{transform_indices = @transform_0, window_bounds = array<i64: 8, 16>}, {transform_indices = @transform_1, window_bounds = array<i64: 8, 13>}]} {
    %c0 = arith.constant 0 : index
    %c0_0 = arith.constant 0 : index
    %0 = vector.load %arg1[%c0, %c0_0] : memref<8x16xf32, #tpu.memory_space<vmem>>, vector<8x13xf32>
    %c0_1 = arith.constant 0 : index
    %c0_2 = arith.constant 0 : index
    %1 = vector.load %arg2[%c0_1, %c0_2] : memref<8x13xf32, #tpu.memory_space<vmem>>, vector<8x13xf32>
    tpu.vector_store %arg2[%c0_1, %c0_2], %0 {strides = array<i32>} : memref<8x13xf32, #tpu.memory_space<vmem>>, vector<8x13xf32>,
    return
  }
  func.func @transform_0(%arg0: i32) -> (i32, i32) {
    %c0_i32 = arith.constant 0 : i32
    %c0_i32_0 = arith.constant 0 : i32
    return %arg0, %c0_i32 : i32, i32
  }
  func.func @transform_1(%arg0: i32) -> (i32, i32) {
    %c0_i32 = arith.constant 0 : i32
    %c0_i32_0 = arith.constant 0 : i32
    return %arg0, %c0_i32 : i32, i32
  }
}

</mosaic_0001>

<bundles_post_ra>
// kernel: tpu_custom_call.1
= control target key start
LH: loop header
LB: loop body
LE: loop exit
PB: predicated region body
PF: predicated region fallthrough
CT: control target
= control target key end

     0   :  { %6 = vsyncpa [#allocation3], 0  ;;  %s125_s0 = inlined_call_operand.hbm [shape: f32[8,16], index: 0, kind: input, shape index: {}]   ;;  %s126_s1 = inlined_call_operand.hbm [shape: f32[8,13], index: 1, kind: output, shape index: {}]  }
   0x1   :  { %7 = vsyncpa [#allocation4], 0  ;;  %s89_s6 = smov [#allocation2]   ;;  %s41_s10 = scalar_lea.hbm %s125_s0, 128 }
   0x2   :  { %s14_s7 = sshll.u32 %s89_s6, 4  ;;  %p42_p0 = scmp.ne.s32.totalorder %s125_s0, %s41_s10  ;;  %s15_s7 = int_to_ptr.vmem [resolvable:$true] %s14_s7 }
   0x3   :  { %p45_p1 = scmp.lt.u32.totalorder %s41_s10, %s125_s0 }
   0x5   :  { %p47_p2 = pnand %p45_p1, %p42_p0 }
   0x7   :  { %50 = shalt.err (!%p47_p2)
}
   0x8   :  { %s51_s15 = scalar_lea.vmem %s15_s7, 128  ;;  %p56_p4 = scmp.lt.s32.totalorder %s15_s7, %s15_s7 }
   0x9   :  { %p52_p3 = scmp.ne.s32.totalorder %s15_s7, %s51_s15  ;;  %p57_p5 = scmp.lt.s32.totalorder %s51_s15, %s51_s15 }
   0xb   :  { %p58_p6 = por %p57_p5, %p56_p4 }
   0xd   :  { %p59_p7 = pnand %p58_p6, %p52_p3 }
   0xf   :  { %62 = shalt.err (!%p59_p7)
}
  0x10   :  { %17 = dma.hbm_to_vmem [thread:$0]  %s125_s0, 128, %s15_s7, [#allocation3]  }
  0x11   :  { %85 = dma.done.wait [#allocation3], 128  }
  0x12   :  { %86 = vsyncadd [#allocation3], 4294967168  ;;  %s90_s18 = smov [#allocation5]   ;;  %vm22_vm0 = vcmask 105472   ;;  %v21_v0 = vld [vmem:[#allocation2] sm:$0xff] }
  0x13   :  { %s30_s19 = sshll.u32 %s90_s18, 4  ;;  %23 = vst.msk [vmem:[#allocation5] sm:$0xff] %vm22_vm0, %v21_v0  ;;  %s31_s19 = int_to_ptr.vmem [resolvable:$true] %s30_s19 }
  0x14   :  { %s63_s20 = scalar_lea.vmem %s31_s19, 128  ;;  %p68_p9 = scmp.lt.s32.totalorder %s31_s19, %s31_s19 }
  0x15   :  { %p64_p8 = scmp.ne.s32.totalorder %s31_s19, %s63_s20  ;;  %p69_p10 = scmp.lt.s32.totalorder %s63_s20, %s63_s20 }
  0x17   :  { %p70_p11 = por %p69_p10, %p68_p9 }
  0x19   :  { %p71_p12 = pnand %p70_p11, %p64_p8 }
  0x1b   :  { %74 = shalt.err (!%p71_p12)
}
  0x1c   :  { %s75_s23 = scalar_lea.hbm %s126_s1, 128 }
  0x1d   :  { %p76_p13 = scmp.ne.s32.totalorder %s126_s1, %s75_s23  ;;  %p79_p0 = scmp.lt.u32.totalorder %s75_s23, %s126_s1 }
  0x1f   :  { %p81_p1 = pnand %p79_p0, %p76_p13 }
  0x21   :  { %84 = shalt.err (!%p81_p1)
}
  0x22   :  { %33 = dma.vmem_to_hbm [thread:$0]  %s31_s19, 128, %s126_s1, [#allocation4]  }
  0x23   :  { %87 = dma.done.wait [#allocation4], 128  }
  0x24   :  { %88 = vsyncadd [#allocation4], 4294967168 }
  0x25   :  { %37 = vsyncpa [#allocation3], 1 }
  0x26   :  { %38 = vsyncpa [#allocation4], 1 }

</bundles_post_ra>
